<compile_context>
chip_gen: v7x
topology: tpu7x:2x2x1
jax: 0.10.0
libtpu: 0.0.40
codegen_flags: <defaults>
</compile_context>

<pallas_src>
import functools

import jax
import jax.numpy as jnp
from jax.experimental import pallas as pl
from jax.experimental.pallas import tpu as pltpu

EPS = 1e-5  # torch.nn.LayerNorm default


# ----------------------------------------------------------------- kernels ---

def _fused_kernel(x_ref, gamma_ref, beta_ref, w_ref, b_ref, o_ref):
    """tn == H path: full Linear width per step; W stays resident across the grid."""
    xf = x_ref[...].astype(jnp.float32)
    mean = jnp.mean(xf, axis=-1, keepdims=True)
    xc = xf - mean
    var = jnp.mean(xc * xc, axis=-1, keepdims=True)
    xn = (xc * jax.lax.rsqrt(var + EPS) * gamma_ref[...] + beta_ref[...]).astype(jnp.bfloat16)
    # MXU: bf16 operands, f32 accumulation.
    y = jnp.dot(xn, w_ref[...], preferred_element_type=jnp.float32)
    # dropout (eval mode) = identity; bias + residual add.
    o_ref[...] = (xf + y + b_ref[...]).astype(o_ref.dtype)


def _tiled_kernel(x_ref, gamma_ref, beta_ref, w_ref, b_ref, o_ref, xn_ref, *, tn):
    """tn < H path: N-tiled Linear; LayerNorm computed once per row slab (j == 0)."""
    j = pl.program_id(1)  # N-tile index (inner, "arbitrary" axis)

    @pl.when(j == 0)
    def _():
        xf = x_ref[...].astype(jnp.float32)
        mean = jnp.mean(xf, axis=-1, keepdims=True)
        xc = xf - mean
        var = jnp.mean(xc * xc, axis=-1, keepdims=True)
        xn_ref[...] = (xc * jax.lax.rsqrt(var + EPS) * gamma_ref[...]
                       + beta_ref[...]).astype(jnp.bfloat16)

    y = jnp.dot(xn_ref[...], w_ref[...], preferred_element_type=jnp.float32)

    # Residual from the already-resident full-width x tile (x is streamed from
    # HBM exactly once; no second residual operand).
    col0 = pl.multiple_of(j * tn, 128)
    res = x_ref[:, pl.ds(col0, tn)].astype(jnp.float32)
    o_ref[...] = (res + y + b_ref[...]).astype(o_ref.dtype)


# ----------------------------------------------------------- tile selection ---

def _vmem_capacity_bytes():
    try:
        cap = getattr(pltpu.get_tpu_info(), "vmem_capacity_bytes", None)
        if cap:
            return int(cap)
    except Exception:
        pass
    return 64 * 1024 * 1024  # conservative default (v7x-sized)


def _vmem_needed(rows_tile, H, tn, itemsize, fused):
    n = 2 * rows_tile * H * itemsize       # x tile (double-buffered)
    n += 2 * rows_tile * tn * itemsize     # output tile (double-buffered)
    n += 2 * H * tn * 2                    # bf16 weight tile (double-buffered)
    if not fused:
        n += rows_tile * H * 2             # persistent bf16 LayerNorm scratch
    n += 2 * 3 * H * 4                     # gamma / beta / bias
    return n


def _pick_tn(H, budget):
    # Keep W fully resident (read from HBM exactly once) whenever the
    # double-buffered bf16 weight fits comfortably in the VMEM budget.
    if H % 128 != 0 or 2 * H * H * 2 <= budget // 3:
        return H
    for cand in (512, 256, 128):
        if cand < H and H % cand == 0:
            return cand
    return H


def _pick_rows_tile(R, H, tn, itemsize, sublane, budget, fused):
    cands = [c for c in (1024, 512, 256, 128, 64, 32, 16, 8)
             if c <= R and R % c == 0 and c % sublane == 0]
    if not cands:
        cands = [R]  # tiny input: one slab of all rows
    fitting = [c for c in cands if _vmem_needed(c, H, tn, itemsize, fused) <= budget]
    if not fitting:
        fitting = [cands[-1]]
    # Prefer >= 2 row slabs so the "parallel" axis can split across v7x's 2 TCs.
    split = [c for c in fitting if R // c >= 2]
    return split[0] if split else fitting[0]


# ------------------------------------------------------------------ wrapper ---

def sublayer_connection(x, gamma, beta, w, b, *, rows_tile=None, tn=None):
    """x: (B, S, H). Returns x + Linear(LayerNorm(x)) (dropout in eval mode).

    Tile sizes are auto-derived from the per-generation VMEM capacity unless
    overridden.  tn must be a multiple of 128 (or == H); rows_tile must be a
    multiple of the sublane packing (8 f32 / 16 bf16) or equal B*S.
    """
    B, S, H = x.shape
    R = B * S
    itemsize = jnp.dtype(x.dtype).itemsize
    sublane = 16 if x.dtype == jnp.bfloat16 else 8

    budget = (3 * _vmem_capacity_bytes()) // 4  # ~96 MiB v5e/v6e, ~48 MiB v7x

    if tn is None:
        tn = _pick_tn(H, budget)
    tn = min(tn, H)
    fused = tn == H

    if rows_tile is None:
        rows_tile = _pick_rows_tile(R, H, tn, itemsize, sublane, budget, fused)
    rows_tile = min(rows_tile, R)

    assert R % rows_tile == 0, "batch*seq must be divisible by rows_tile"
    assert H % tn == 0, "hidden must be divisible by tn"
    assert tn == H or tn % 128 == 0, "tn must be a multiple of 128 (or == H)"
    assert rows_tile == R or rows_tile % sublane == 0, (
        "rows_tile must match sublane packing (8 for f32, 16 for bf16)")

    x2d = x.reshape(R, H)
    gamma2d = gamma.astype(jnp.float32).reshape(1, H)
    beta2d = beta.astype(jnp.float32).reshape(1, H)
    b2d = b.astype(jnp.float32).reshape(1, H)
    w_bf16 = w.astype(jnp.bfloat16)  # halves W HBM traffic; MXU operands are bf16

    needed = _vmem_needed(rows_tile, H, tn, itemsize, fused)
    vmem_limit = int(min(budget, max(needed + (2 << 20), 32 << 20)))

    if fused:
        grid = (R // rows_tile,)
        kernel = _fused_kernel
        in_specs = [
            pl.BlockSpec((rows_tile, H), lambda i: (i, 0)),  # x (LN + residual)
            pl.BlockSpec((1, H), lambda i: (0, 0)),          # gamma
            pl.BlockSpec((1, H), lambda i: (0, 0)),          # beta
            pl.BlockSpec((H, H), lambda i: (0, 0)),          # W (resident, one DMA)
            pl.BlockSpec((1, H), lambda i: (0, 0)),          # bias
        ]
        out_specs = pl.BlockSpec((rows_tile, H), lambda i: (i, 0))
        scratch_shapes = []
        dims = ("parallel",)
    else:
        grid = (R // rows_tile, H // tn)
        kernel = functools.partial(_tiled_kernel, tn=tn)
        in_specs = [
            pl.BlockSpec((rows_tile, H), lambda i, j: (i, 0)),  # x (LN + residual)
            pl.BlockSpec((1, H), lambda i, j: (0, 0)),          # gamma
            pl.BlockSpec((1, H), lambda i, j: (0, 0)),          # beta
            pl.BlockSpec((H, tn), lambda i, j: (0, j)),         # W tile
            pl.BlockSpec((1, tn), lambda i, j: (0, j)),         # bias tile
        ]
        out_specs = pl.BlockSpec((rows_tile, tn), lambda i, j: (i, j))
        scratch_shapes = [pltpu.VMEM((rows_tile, H), jnp.bfloat16)]  # LN result reuse
        dims = ("parallel", "arbitrary")  # N axis carries the LN scratch

    out2d = pl.pallas_call(
        kernel,
        out_shape=jax.ShapeDtypeStruct((R, H), x.dtype),
        grid_spec=pltpu.PrefetchScalarGridSpec(
            num_scalar_prefetch=0,
            grid=grid,
            in_specs=in_specs,
            out_specs=out_specs,
            scratch_shapes=scratch_shapes,
        ),
        compiler_params=pltpu.CompilerParams(
            dimension_semantics=dims,
            vmem_limit_bytes=vmem_limit,
        ),
        # Single x operand -> clean alias of x's HBM buffer: every row slab of x
        # is DMA'd into VMEM before any output tile of those rows is written.
        input_output_aliases={0: 0},
    )(x2d, gamma2d, beta2d, w_bf16, b2d)

    return out2d.reshape(B, S, H)


# ---------------------------------------------------------------- reference ---

def _reference(x, gamma, beta, w, b, *, matmul_dtype=jnp.bfloat16):
    """Pure-JAX reference; matmul_dtype mirrors the kernel's MXU operand dtype."""
    xf = x.astype(jnp.float32)
    mean = jnp.mean(xf, axis=-1, keepdims=True)
    var = jnp.mean((xf - mean) ** 2, axis=-1, keepdims=True)
    xn = (xf - mean) * jax.lax.rsqrt(var + EPS) * gamma + beta
    y = jnp.dot(xn.reshape(-1, x.shape[-1]).astype(matmul_dtype),
                w.astype(matmul_dtype),
                preferred_element_type=jnp.float32).reshape(xf.shape)
    return (xf + y + b).astype(x.dtype)


def _check(out, x, gamma, beta, w, b):
    assert out.shape == x.shape and out.dtype == x.dtype
    ref_bf16 = _reference(x, gamma, beta, w, b, matmul_dtype=jnp.bfloat16)
    ref_f32 = _reference(x, gamma, beta, w, b, matmul_dtype=jnp.float32)
    err_b = jnp.max(jnp.abs(out - ref_bf16))
    err_f = jnp.max(jnp.abs(out - ref_f32))
    assert jnp.allclose(out, ref_bf16, atol=1e-2, rtol=1e-2), f"bf16-ref err {err_b}"
    assert jnp.allclose(out, ref_f32, atol=6e-2, rtol=6e-2), f"f32-ref err {err_f}"


if __name__ == "__main__":
    # --- small shape implied by the module's canonical use: (batch, seq, hidden) ---
    B, S, H = 2, 8, 32
    key = jax.random.PRNGKey(0)
    kx, kw, kb = jax.random.split(key, 3)

    x = jax.random.normal(kx, (B, S, H), dtype=jnp.float32)
    gamma = jnp.ones((H,), jnp.float32)                       # LayerNorm weight
    beta = jnp.zeros((H,), jnp.float32)                       # LayerNorm bias
    w = jax.random.normal(kw, (H, H), jnp.float32) * 0.05     # Linear weight (x @ W)
    b = jax.random.normal(kb, (H,), jnp.float32) * 0.01       # Linear bias

    out = jax.block_until_ready(sublayer_connection(x, gamma, beta, w, b))
    _check(out, x, gamma, beta, w, b)

    # --- larger shape: auto-config picks the fused, resident-W path ---
    B2, S2, H2 = 2, 64, 256
    kx2, kw2, kb2, kg2, kbt2 = jax.random.split(jax.random.PRNGKey(1), 5)
    x2 = jax.random.normal(kx2, (B2, S2, H2), dtype=jnp.float32)
    gamma2 = 1.0 + 0.1 * jax.random.normal(kg2, (H2,), jnp.float32)
    beta2 = 0.1 * jax.random.normal(kbt2, (H2,), jnp.float32)
    w2 = jax.random.normal(kw2, (H2, H2), jnp.float32) * 0.05
    b2 = jax.random.normal(kb2, (H2,), jnp.float32) * 0.01

    out2 = jax.block_until_ready(sublayer_connection(x2, gamma2, beta2, w2, b2))
    _check(out2, x2, gamma2, beta2, w2, b2)

    # --- forced N-tiled path: 2 row slabs x 2 N tiles (validates LN scratch reuse
    #     and the in-kernel residual slice) ---
    out3 = jax.block_until_ready(
        sublayer_connection(x2, gamma2, beta2, w2, b2, rows_tile=64, tn=128))
    _check(out3, x2, gamma2, beta2, w2, b2)

    print("KERNEL_OK")
</pallas_src>

<mosaic_0001>
module attributes {stable_mosaic.version = 11 : i64} {
  func.func @_fused_kernel(%arg0: i32, %arg1: memref<8x32xf32, #tpu.memory_space<vmem>>, %arg2: memref<1x32xf32, #tpu.memory_space<vmem>>, %arg3: memref<1x32xf32, #tpu.memory_space<vmem>>, %arg4: memref<32x32xbf16, #tpu.memory_space<vmem>>, %arg5: memref<1x32xf32, #tpu.memory_space<vmem>>, %arg6: memref<8x32xf32, #tpu.memory_space<vmem>>) attributes {dimension_semantics = [#tpu.dimension_semantics<parallel>], iteration_bounds = array<i64: 2>, scalar_prefetch = 0 : i64, scratch_operands = 0 : i64, tpu.core_type = #tpu.core_type<tc>, window_params = [{transform_indices = @transform_0, window_bounds = array<i64: 8, 32>}, {pipeline_mode = #tpu.pipeline_mode<synchronous>, transform_indices = @transform_1, window_bounds = array<i64: 1, 32>}, {pipeline_mode = #tpu.pipeline_mode<synchronous>, transform_indices = @transform_2, window_bounds = array<i64: 1, 32>}, {pipeline_mode = #tpu.pipeline_mode<synchronous>, transform_indices = @transform_3, window_bounds = array<i64: 32, 32>}, {pipeline_mode = #tpu.pipeline_mode<synchronous>, transform_indices = @transform_4, window_bounds = array<i64: 1, 32>}, {transform_indices = @transform_5, window_bounds = array<i64: 8, 32>}]} {
    %c0 = arith.constant 0 : index
    %c0_0 = arith.constant 0 : index
    %0 = vector.load %arg1[%c0, %c0_0] : memref<8x32xf32, #tpu.memory_space<vmem>>, vector<8x32xf32>
    %cst = arith.constant dense<0.000000e+00> : vector<8xf32>
    %1 = vector.multi_reduction <add>, %0, %cst [1] : vector<8x32xf32> to vector<8xf32>
    %2 = vector.shape_cast %1 : vector<8xf32> to vector<8x1xf32>
    %cst_1 = arith.constant 3.200000e+01 : f32
    %3 = vector.broadcast %cst_1 : f32 to vector<8x1xf32>
    %4 = arith.divf %2, %3 : vector<8x1xf32>
    %5 = vector.broadcast %4 : vector<8x1xf32> to vector<8x32xf32>
    %6 = arith.subf %0, %5 : vector<8x32xf32>
    %7 = arith.mulf %6, %6 : vector<8x32xf32>
    %cst_2 = arith.constant dense<0.000000e+00> : vector<8xf32>
    %8 = vector.multi_reduction <add>, %7, %cst_2 [1] : vector<8x32xf32> to vector<8xf32>
    %9 = vector.shape_cast %8 : vector<8xf32> to vector<8x1xf32>
    %cst_3 = arith.constant 3.200000e+01 : f32
    %10 = vector.broadcast %cst_3 : f32 to vector<8x1xf32>
    %11 = arith.divf %9, %10 : vector<8x1xf32>
    %cst_4 = arith.constant 9.99999974E-6 : f32
    %12 = vector.broadcast %cst_4 : f32 to vector<8x1xf32>
    %13 = arith.addf %11, %12 : vector<8x1xf32>
    %14 = math.rsqrt %13 : vector<8x1xf32>
    %15 = vector.broadcast %14 : vector<8x1xf32> to vector<8x32xf32>
    %16 = arith.mulf %6, %15 : vector<8x32xf32>
    %c0_5 = arith.constant 0 : index
    %c0_6 = arith.constant 0 : index
    %17 = vector.load %arg2[%c0_5, %c0_6] : memref<1x32xf32, #tpu.memory_space<vmem>>, vector<1x32xf32>
    %18 = vector.broadcast %17 : vector<1x32xf32> to vector<8x32xf32>
    %19 = arith.mulf %16, %18 : vector<8x32xf32>
    %c0_7 = arith.constant 0 : index
    %c0_8 = arith.constant 0 : index
    %20 = vector.load %arg3[%c0_7, %c0_8] : memref<1x32xf32, #tpu.memory_space<vmem>>, vector<1x32xf32>
    %21 = vector.broadcast %20 : vector<1x32xf32> to vector<8x32xf32>
    %22 = arith.addf %19, %21 : vector<8x32xf32>
    %23 = arith.truncf %22 : vector<8x32xf32> to vector<8x32xbf16>
    %c0_9 = arith.constant 0 : index
    %c0_10 = arith.constant 0 : index
    %24 = vector.load %arg4[%c0_9, %c0_10] : memref<32x32xbf16, #tpu.memory_space<vmem>>, vector<32x32xbf16>
    %cst_11 = arith.constant dense<0.000000e+00> : vector<8x32xf32>
    %25 = tpu.matmul %23, %24, %cst_11 {dimension_numbers = #tpu.dot_dimension_numbers<[1], [0], [0], [1], [0, 0, 1, 1], [], []>} : vector<8x32xbf16>, vector<32x32xbf16>, vector<8x32xf32> -> vector<8x32xf32>
    %26 = arith.addf %0, %25 : vector<8x32xf32>
    %c0_12 = arith.constant 0 : index
    %c0_13 = arith.constant 0 : index
    %27 = vector.load %arg5[%c0_12, %c0_13] : memref<1x32xf32, #tpu.memory_space<vmem>>, vector<1x32xf32>
    %28 = vector.broadcast %27 : vector<1x32xf32> to vector<8x32xf32>
    %29 = arith.addf %26, %28 : vector<8x32xf32>
    %c0_14 = arith.constant 0 : index
    %c0_15 = arith.constant 0 : index
    %30 = vector.load %arg6[%c0_14, %c0_15] : memref<8x32xf32, #tpu.memory_space<vmem>>, vector<8x32xf32>
    tpu.vector_store %arg6[%c0_14, %c0_15], %29 {strides = array<i32>} : memref<8x32xf32, #tpu.memory_space<vmem>>, vector<8x32xf32>,
    return
  }
  func.func @transform_0(%arg0: i32) -> (i32, i32) {
    %c0_i32 = arith.constant 0 : i32
    %c0_i32_0 = arith.constant 0 : i32
    return %arg0, %c0_i32 : i32, i32
  }
  func.func @transform_1(%arg0: i32) -> (i32, i32) {
    %c0_i32 = arith.constant 0 : i32
    %c0_i32_0 = arith.constant 0 : i32
    %c0_i32_1 = arith.constant 0 : i32
    return %c0_i32, %c0_i32_0 : i32, i32
  }
  func.func @transform_2(%arg0: i32) -> (i32, i32) {
    %c0_i32 = arith.constant 0 : i32
    %c0_i32_0 = arith.constant 0 : i32
    %c0_i32_1 = arith.constant 0 : i32
    return %c0_i32, %c0_i32_0 : i32, i32
  }
  func.func @transform_3(%arg0: i32) -> (i32, i32) {
    %c0_i32 = arith.constant 0 : i32
    %c0_i32_0 = arith.constant 0 : i32
    %c0_i32_1 = arith.constant 0 : i32
    return %c0_i32, %c0_i32_0 : i32, i32
  }
  func.func @transform_4(%arg0: i32) -> (i32, i32) {
    %c0_i32 = arith.constant 0 : i32
    %c0_i32_0 = arith.constant 0 : i32
    %c0_i32_1 = arith.constant 0 : i32
    return %c0_i32, %c0_i32_0 : i32, i32
  }
  func.func @transform_5(%arg0: i32) -> (i32, i32) {
    %c0_i32 = arith.constant 0 : i32
    %c0_i32_0 = arith.constant 0 : i32
    return %arg0, %c0_i32 : i32, i32
  }
}

</mosaic_0001>

<bundles_post_ra>
// kernel: tpu_custom_call.1
= control target key start
LH: loop header
LB: loop body
LE: loop exit
PB: predicated region body
PF: predicated region fallthrough
CT: control target
= control target key end

     0   :  { %10 = vsyncpa [#allocation3], 0  ;;  %s824_s0 = inlined_call_operand.hbm [shape: f32[16,32], index: 0, kind: input, shape index: {}, may-alias: {0,5}]   ;;  %s825_s1 = inlined_call_operand.vmem [shape: f32[1,32], index: 1, kind: input, shape index: {}]   ;;  %s826_s2 = inlined_call_operand.vmem [shape: f32[1,32], index: 2, kind: input, shape index: {}]   ;;  %s827_s3 = inlined_call_operand.vmem [shape: bf16[32,32], index: 3, kind: input, shape index: {}]   ;;  %s828_s4 = inlined_call_operand.vmem [shape: f32[1,32], index: 4, kind: input, shape index: {}]   ;;  %s829_s5 = inlined_call_operand.hbm [shape: f32[16,32], index: 5, kind: output, shape index: {}, may-alias: {0,5}]  }
   0x1   :  { %12 = vsyncpa [#allocation3 + $0x1], 0 }
   0x2   :  { %13 = vsyncpa [#allocation4], 0 }
   0x3   :  { %15 = vsyncpa [#allocation4 + $0x1], 0  ;;  %s640_s18 = smov 0   ;;  %s642_s19 = smov 0  }
   0x4   :  { %s644_s20 = smov 0   ;;  %s646_s21 = smov 0  }
   0x5 LB: > { %s661_s22 = sadd.s32 4294967295, %s604_s21   ;;  %s427_s23 = sadd.s32 4294967294, %s604_s21   ;;  %s604_s21 = sphi %s646_s21, %s844_s21   ;;  %s600_s20 = sphi %s644_s20, %s843_s20   ;;  %s596_s19 = sphi %s642_s19, %s842_s19   ;;  %s592_s18 = sphi %s640_s18, %s841_s18  }
   0x6   : > { %s665_s24 = sadd.s32 1, %s604_s21   ;;  %s28_s25 = sadd.s32 1, %s600_s20 }
   0x7   : > { %s25_s26 = ssub.s32 %s604_s21, %s665_s24  ;;  %p35_p0 = scmp.ne.s32.totalorder %s600_s20, %s596_s19 }
   0x8   : > { %p26_p1 = scmp.eq.s32.totalorder %s25_s26, 0  ;;  %p36_p2 = scmp.eq.s32.totalorder %s604_s21, 0 }
   0x9   : > { %p41_p3 = scmp.ne.s32.totalorder %s596_s19, %s592_s18  ;;  %p42_p4 = scmp.eq.s32.totalorder %s661_s22, 0 }
   0xa   : > { %s677_s27 = scalar_select %p26_p1, %s600_s20, %s28_s25  }
   0xb   : > { %p679_p5 = por %p36_p2, %p35_p0  ;;  %p683_p6 = por %p42_p4, %p41_p3 }
   0xc   : > { %p149_p7 = scmp.eq.s32.totalorder %s661_s22, 1  ;;  %p155_p8 = scmp.eq.s32.totalorder %s427_s23, 1 }
   0xd   : > { %p468_p10 = scmp.lt.s32.totalorder %s604_s21, 2  ;;  %s187_s7 = sand.u32 1, %s600_s20  }
   0xe   : > { %p690_p11 = por %p149_p7, %p35_p0  ;;  %p694_p12 = por %p155_p8, %p41_p3 }
   0xf   : > { %s431_s8 = sshll.u32 %s604_s21, 7  ;;  %s430_s9 = sshll.u32 %s187_s7, 3 }
  0x10   : > { %s833_s30 = scalar_select %p690_p11, 1, 0 }
  0x11   : > { %s834_s6 = scalar_select %p694_p12, 1, 0 }
  0x12   : > { %s703_s12 = scalar_lea.hbm %s824_s0, %s431_s8  ;;  %s191_s13 = scalar_lea.vmem [#allocation2], %s430_s9 }
  0x13   : > { %s198_s14 = sshll.u32 %s191_s13, 4  ;;  %p707_p13 = pnand %p468_p10, %p679_p5  ;;  %s711_s14 = int_to_ptr.vmem [resolvable:$true] %s198_s14 }
  0x14   : > { %s188_s16 = scalar_lea.sflag [#allocation3], %s187_s7  ;;  %s508_s17 = scalar_lea.hbm %s703_s12, 128 }
  0x15   : > { %p509_p2 = scmp.ne.s32.totalorder %s703_s12, %s508_s17  ;;  %p510_p3 = pneg %p707_p13 }
  0x16   : > { %s513_s26 = scalar_lea.hbm %s824_s0, 256  ;;  %p514_p5 = scmp.lt.u32.totalorder %s703_s12, %s824_s0 }
  0x17   : > { %p511_p4 = pnand %p510_p3, %p509_p2  ;;  %p515_p8 = scmp.lt.u32.totalorder %s513_s26, %s508_s17 }
  0x18   : > { %p517_p9 = scmp.lt.u32.totalorder %s508_s17, %s703_s12 }
  0x19   : > { %p512_p7 = pneg %p511_p4  ;;  %p516_p10 = por %p515_p8, %p514_p5 }
  0x1b   : > { %p518_p0 = por %p517_p9, %p516_p10 }
  0x1d   : > { %p519_p1 = pnand %p518_p0, %p512_p7 }
  0x1f   : > { %522 = shalt.err (!%p519_p1)
}
  0x20   : > { %s523_s7 = scalar_lea.vmem %s711_s14, 128  ;;  %s606_s9 = smov [#allocation2]  }
  0x21   : > { %p524_p2 = scmp.ne.s32.totalorder %s711_s14, %s523_s7  ;;  %s528_s10 = sshll.u32 %s606_s9, 4  ;;  %s529_s10 = int_to_ptr.vmem [resolvable:$false] %s528_s10 }
  0x22   : > { %s530_s11 = scalar_lea.vmem %s529_s10, 256  ;;  %p531_p11 = scmp.lt.s32.totalorder %s711_s14, %s529_s10 }
  0x23   : > { %p526_p4 = pnand %p524_p2, %p510_p3  ;;  %p532_p5 = scmp.lt.s32.totalorder %s530_s11, %s523_s7 }
  0x25   : > { %p527_p12 = pneg %p526_p4  ;;  %p533_p8 = por %p532_p5, %p531_p11 }
  0x27   : > { %p534_p9 = pnand %p533_p8, %p527_p12 }
  0x29   : > { %537 = shalt.err (!%p534_p9)
}
  0x2a   : > { %463 = dma.hbm_to_vmem [thread:$0]  (!%p707_p13), %s703_s12, 128, %s711_s14, %s188_s16  }
  0x2b   : > { %p836_p0 = scmp.lt.s32.totalorder %s604_s21, 3  ;;  %p837_p1 = scmp.ge.s32.totalorder %s604_s21, 1 }
  0x2d   : > { %p204_p3 = pnand %p837_p1, %p836_p0 }
  0x2e   : > { %s745_s13 = sand.u32 (!%p204_p3), 1, %s596_s19  }
  0x2f   : > { %207 = sbr.rel (%p204_p3) target bundleno = 601 (0x259), region = 40  ;;  %s433_s17 = sshll.u32 (!%p204_p3), %s745_s13, 3 }
  0x30   : > { %s210_s23 = scalar_lea.sflag (!%p204_p3), [#allocation3], %s745_s13  ;;  %s213_s15 = scalar_lea.vmem (!%p204_p3), [#allocation2], %s433_s17 }
  0x36   : > { %583 = dma.done.wait (%p683_p6), %s210_s23, 128  }
  0x37   : > { %585 = vsyncadd (%p683_p6), %s210_s23, 4294967168  ;;  %vm242_vm0 = vcmask 261120   ;;  %v241_v0 = vld [vmem:[%s213_s15] sm:$0xff]  ;;  %v607_v8 = vmov 0.0   ;;  %vm608_vm1 = vmmov 0   ;;  %s442_s10 = sshll.u32 %s661_s22, 7 }
  0x38   : > { %v243_v1 = vsel %vm242_vm0, %v241_v0, 0.0  ;;  %v504_v7 = vld [vmem:[%s827_s3] sm:$0xff]   ;;  %448 = vmatprep.subr.bf16.mxu0 %v607_v8  ;;  %v505_v9 = vld [vmem:[%s827_s3 + $0x8] sm:$0xff]   ;;  %452 = vmatprep.mubr.msk.bf16.mxu0 %vm608_vm1, %v607_v8  ;;  %s239_s11 = scalar_lea.vmem [#allocation5], %s433_s17  ;;  %s779_s14 = scalar_lea.hbm %s829_s5, %s442_s10 }
  0x39   : > { %244 = vadd.xlane.f32.xlu0 %v243_v1  ;;  %449 = vmatpush3.bf16.msra.mxu0 %v504_v7  ;;  %v435_v14 = vld [vmem:[%s825_s1] ss:$0 sm:$0xff]  ;;  %s357_s23 = sshll.u32 %s239_s11, 4  ;;  %s344_s22 = scalar_lea.sflag [#allocation4], %s745_s13  ;;  %s781_s23 = int_to_ptr.vmem [resolvable:$true] %s357_s23 }
  0x3a   : > { %450 = vmatprep.subr.bf16.mxu0 %v607_v8  ;;  %v436_v16 = vld [vmem:[%s826_s2] ss:$0 sm:$0xff]  ;;  %s538_s17 = scalar_lea.vmem %s781_s23, 128  ;;  %p838_p11 = scmp.ne.s32.totalorder %s833_s30, 0 }
  0x3b   : > { %v440_v21 = vld [vmem:[%s828_s4] ss:$0 sm:$0xff]  ;;  %p539_p6 = scmp.ne.s32.totalorder %s781_s23, %s538_s17  ;;  %s609_s29 = smov [#allocation5]  }
  0x3c   : > { %s542_s16 = sshll.u32 %s609_s29, 4  ;;  %s543_s16 = int_to_ptr.vmem [resolvable:$false] %s542_s16 }
  0x3d   : > { %451 = vmatpush3.bf16.msra.mxu0 %v505_v9  ;;  %p540_p12 = pnand %p539_p6, %p838_p11  ;;  %s544_s25 = scalar_lea.vmem %s543_s16, 256 }
  0x3e   : > { %p545_p7 = scmp.lt.s32.totalorder %s781_s23, %s543_s16  ;;  %p546_p10 = scmp.lt.s32.totalorder %s544_s25, %s538_s17 }
  0x3f   : > { %p541_p13 = pneg %p540_p12 }
  0x40   : > { %p547_p2 = por %p546_p10, %p545_p7 }
  0x42   : > { %p548_p4 = pnand %p547_p2, %p541_p13 }
  0xc6   : > { %v245_v2 = vpop.xlane.xlu0 %244 }
  0xc7   : > { %v247_v3 = vmul.f32 0.03125, %v245_v2 }
  0xc9   : > { %v248_v4 = vsub.f32 %v241_v0, %v247_v3 }
  0xcb   : > { %v249_v5 = vmul.f32 %v248_v4, %v248_v4 }
  0xcd   : > { %v250_v6 = vsel %vm242_vm0, %v249_v5, 0.0 }
  0xce   : > { %251 = vadd.xlane.f32.xlu0 %v250_v6 }
 0x15b   : > { %v252_v10 = vpop.xlane.xlu0 %251 }
 0x15c   : > { %v253_v11 = vmul.f32 0.03125, %v252_v10 }
 0x15e   : > { %v254_v12 = vadd.f32 1e-05, %v253_v11 }
 0x160   : > { %506 = vrsqrt.f32 %v254_v12 }
 0x16a   : > { %v507_v13 = vpop.eup %506 }
 0x16b   : > { %v256_v15 = vmul.f32 %v507_v13, %v248_v4 }
 0x16d   : > { %v264_v17 = vmul.f32 %v435_v14, %v256_v15 }
 0x16f   : > { %v272_v18 = vadd.f32 %v436_v16, %v264_v17 }
 0x171   : > { %v273_v19 = vpack.c.bf16 %v272_v18, %v272_v18 }
 0x173   : > { %453 = vmatmul.mubr.msk.bf16.vlgmr.msra.gmra.mrb[0].mxu0 %vm242_vm0, %v273_v19 }
 0x246   : > { %v327_v20 = vpop.f32.mrb[0].mxu0 }
 0x247   : > { %v333_v22 = vadd.f32 %v327_v20, %v241_v0  ;;  %v454_v23 = vpop.f32.mrb[1].mxu0 }
 0x248   : > { %v330_v24 = vpop.f32.mrb[2].mxu0 }
 0x249   : > { %v341_v25 = vadd.f32 %v440_v21, %v333_v22  ;;  %v455_v26 = vpop.f32.mrb[3].mxu0 }
 0x24b   : > { %342 = vst.msk [vmem:[%s239_s11] sm:$0xff] %vm242_vm0, %v341_v25 }
 0x24c   : > { %551 = shalt.err (!%p548_p4)
}
 0x24d   : > { %s552_s13 = scalar_lea.hbm %s779_s14, 128  ;;  %s556_s8 = scalar_lea.hbm %s829_s5, 256 }
 0x24e   : > { %p553_p5 = scmp.ne.s32.totalorder %s779_s14, %s552_s13  ;;  %p557_p0 = scmp.lt.u32.totalorder %s779_s14, %s829_s5 }
 0x24f   : > { %p558_p1 = scmp.lt.u32.totalorder %s556_s8, %s552_s13  ;;  %p560_p6 = scmp.lt.u32.totalorder %s552_s13, %s779_s14 }
 0x250   : > { %p554_p8 = pnand %p553_p5, %p838_p11 }
 0x251   : > { %p559_p3 = por %p558_p1, %p557_p0 }
 0x252   : > { %p555_p9 = pneg %p554_p8 }
 0x253   : > { %p561_p12 = por %p560_p6, %p559_p3 }
 0x255   : > { %p562_p13 = pnand %p561_p12, %p555_p9 }
 0x257   : > { %565 = shalt.err (!%p562_p13)
}
 0x258   : > { %458 = dma.vmem_to_hbm [thread:$0]  (%p838_p11), %s781_s23, 128, %s779_s14, %s344_s22  }
 0x259 PF: > { %s369_s10 = sand.u32 1, %s592_s18   ;;  %p839_p7 = scmp.ne.s32.totalorder %s834_s6, 0 }
 0x25a   : > { %p840_p10 = scmp.ge.s32.totalorder %s604_s21, 2  ;;  %s370_s11 = scalar_lea.sflag [#allocation4], %s369_s10 }
 0x25c   : > { %p465_p2 = pnand %p840_p10, %p839_p7 }
 0x25e   : > { %587 = dma.done.wait (!%p465_p2), %s370_s11, 128  }
 0x25f   : > { %589 = vsyncadd (!%p465_p2), %s370_s11, 4294967168  ;;  %p18_p4 = scmp.ge.s32.totalorder %s665_s24, 4   ;;  %s841_s18 = smov %s596_s19 }
 0x260   : > { %s842_s19 = smov %s600_s20  ;;  %s843_s20 = smov %s677_s27 }
 0x261   : > { %s844_s21 = smov %s665_s24  ;;  %20 = sbr.rel (!%p18_p4) target bundleno = 5 (0x5), region = 85 }
 0x268   :  { %375 = vsyncpa [#allocation3], 1 }
 0x269   :  { %377 = vsyncpa [#allocation3 + $0x1], 1 }
 0x26a   :  { %378 = vsyncpa [#allocation4], 1 }
 0x26b   :  { %380 = vsyncpa [#allocation4 + $0x1], 1 }

</bundles_post_ra>
